<compile_context>
chip_gen: v6e
topology: v6e:2x2x1
jax: 0.10.0
libtpu: 0.0.40
codegen_flags: <defaults>
</compile_context>

<pallas_src>
import functools

import jax
import jax.numpy as jnp
from jax.experimental import pallas as pl
from jax.experimental.pallas import tpu as pltpu

D_IN = 32
D_HID = 64
LANES = 128
PACK = LANES // D_IN          # 4 feature-rows packed per 128-lane vector row
LN_EPS = 1e-5
VMEM_LIMIT = 40 * 1024 * 1024


def _cdiv(a, b):
    return -(-a // b)


def _round_up(a, b):
    return _cdiv(a, b) * b


def _default_block_rows():
    """Packed (128-lane) rows per grid step, chosen per chip generation."""
    try:
        kind = jax.devices()[0].device_kind.lower()
    except Exception:
        return 1024
    if "v7" in kind:
        # v7x: 3.2 TB/s HBM but only 64 MiB VMEM/TC -> 2 MiB input tiles.
        return 4096
    return 2048  # v6e / v5e: fits comfortably under the raised scoped-VMEM limit


def ffn_kernel(x_ref, g_ref, w1_ref, b1_ref, w2_ref, b2_ref, o_ref):
    x = x_ref[...]                                    # (tm, 128) f32, lane-dense
    g = g_ref[...]                                    # (128, 128) bf16 group-mean matrix
    xb = x.astype(jnp.bfloat16)

    # LayerNorm statistics per 32-lane group.  gmat both averages and
    # re-broadcasts within each group (MXU work, free under the DMA of a
    # memory-bound kernel).  mean and E[x^2] are independent -> back-to-back.
    mean = jnp.dot(xb, g, preferred_element_type=jnp.float32)
    ex2 = jnp.dot((x * x).astype(jnp.bfloat16), g,
                  preferred_element_type=jnp.float32)
    var = jnp.maximum(ex2 - mean * mean, 0.0)          # clamp: bf16 rounding can go < 0
    xn = ((x - mean) * jax.lax.rsqrt(var + LN_EPS)).astype(jnp.bfloat16)

    # Linear(32 -> 64) + ReLU, block-diagonal packed weights (LN gamma/beta
    # folded into W1/b1 in the wrapper): (tm, 256).
    h = jnp.dot(xn, w1_ref[...], preferred_element_type=jnp.float32) + b1_ref[...]
    h = jnp.maximum(h, 0.0).astype(jnp.bfloat16)

    # Linear(64 -> 32), block-diagonal packed weights: (tm, 128).
    y = jnp.dot(h, w2_ref[...], preferred_element_type=jnp.float32) + b2_ref[...]

    # Residual add with the original (un-normalized, f32) input.
    o_ref[...] = (x + y).astype(o_ref.dtype)


def prepare_params(gamma, beta, w1, b1, w2, b2):
    """One-time parameter packing (hoisted out of the per-call path).

    w1: (32, 64), w2: (64, 32) stored as (in_features, out_features).
    """
    f32 = jnp.float32
    bf16 = jnp.bfloat16
    w1f = (w1 * gamma[:, None]).astype(f32)            # fold LN gamma into W1
    b1f = (b1 + beta @ w1).astype(f32)                  # fold LN beta into b1
    eye = jnp.eye(PACK, dtype=f32)
    # Group-mean matrix: averages (and re-broadcasts) within each 32-lane group.
    gmat = jnp.kron(eye, jnp.full((D_IN, D_IN), 1.0 / D_IN, dtype=f32))
    return {
        "gmat": gmat.astype(bf16),                                   # (128, 128)
        "w1": jnp.kron(eye, w1f).astype(bf16),                       # (128, 256)
        "b1": jnp.tile(b1f, PACK).reshape(1, PACK * D_HID),          # (1, 256) f32
        "w2": jnp.kron(eye, w2.astype(f32)).astype(bf16),            # (256, 128)
        "b2": jnp.tile(b2.astype(f32), PACK).reshape(1, LANES),      # (1, 128) f32
    }


@functools.partial(jax.jit, static_argnames=("block_rows",))
def fully_connected_output(x, params, *, block_rows=None):
    """x: [B, S, 32] float32 -> [B, S, 32] float32."""
    B, S, D = x.shape
    assert D == D_IN
    N = B * S
    if block_rows is None:
        block_rows = _default_block_rows()

    # Packed-row tiling: largest tile <= block_rows, padded so every block is
    # full-width / unmasked.  Guarantee >= 2 grid steps (preferably an even
    # count) so the "parallel" axis shards across both v7x TensorCores.
    P = _cdiv(N, PACK)
    tm = min(block_rows, _round_up(max(P, 1), 8))
    grid_m = _cdiv(P, tm)
    if grid_m == 1 and P > 8:
        tm = _round_up(_cdiv(P, 2), 8)
        grid_m = _cdiv(P, tm)
    elif grid_m > 1 and grid_m % 2 == 1:
        tm_even = _round_up(_cdiv(P, grid_m + 1), 8)
        if tm_even >= 8 and _cdiv(P, tm_even) % 2 == 0:
            tm = tm_even
            grid_m = _cdiv(P, tm)
    P_pad = grid_m * tm
    N_pad = P_pad * PACK

    x2 = x.reshape(N, D)
    if N_pad != N:
        x2 = jnp.pad(x2, ((0, N_pad - N), (0, 0)))      # zero rows stay finite in LN
    xp = x2.reshape(P_pad, LANES)                        # lane-dense packed layout

    out = pl.pallas_call(
        ffn_kernel,
        out_shape=jax.ShapeDtypeStruct((P_pad, LANES), x.dtype),
        grid_spec=pltpu.PrefetchScalarGridSpec(
            num_scalar_prefetch=0,
            grid=(grid_m,),
            in_specs=[
                pl.BlockSpec((tm, LANES), lambda i: (i, 0)),            # packed x rows
                pl.BlockSpec((LANES, LANES), lambda i: (0, 0)),         # group-mean matrix
                pl.BlockSpec((LANES, PACK * D_HID), lambda i: (0, 0)),  # W1_big (bf16)
                pl.BlockSpec((1, PACK * D_HID), lambda i: (0, 0)),      # b1_big (f32)
                pl.BlockSpec((PACK * D_HID, LANES), lambda i: (0, 0)),  # W2_big (bf16)
                pl.BlockSpec((1, LANES), lambda i: (0, 0)),             # b2_big (f32)
            ],
            out_specs=pl.BlockSpec((tm, LANES), lambda i: (i, 0)),
        ),
        compiler_params=pltpu.CompilerParams(
            dimension_semantics=("parallel",),
            vmem_limit_bytes=VMEM_LIMIT,
        ),
    )(xp, params["gmat"], params["w1"], params["b1"], params["w2"], params["b2"])

    return out.reshape(N_pad, D)[:N].reshape(B, S, D)


def reference(x, gamma, beta, w1, b1, w2, b2):
    mean = jnp.mean(x, axis=-1, keepdims=True)
    var = jnp.mean((x - mean) ** 2, axis=-1, keepdims=True)
    xn = (x - mean) / jnp.sqrt(var + LN_EPS) * gamma + beta
    h = jnp.maximum(xn @ w1 + b1, 0.0)
    y = h @ w2 + b2
    return x + y


def _run_case(key, B, S, block_rows=None):
    kx, k1, k2, k3, k4, k5, k6 = jax.random.split(key, 7)
    x = jax.random.normal(kx, (B, S, D_IN), dtype=jnp.float32)

    # Deterministic synthetic parameters (shapes from the module's __init__),
    # stored as (in_features, out_features) so the kernel does x @ W directly.
    w1 = jax.random.normal(k1, (D_IN, D_HID), dtype=jnp.float32) * (1.0 / jnp.sqrt(D_IN))
    b1 = jax.random.normal(k2, (D_HID,), dtype=jnp.float32) * 0.01
    w2 = jax.random.normal(k3, (D_HID, D_IN), dtype=jnp.float32) * (1.0 / jnp.sqrt(D_HID))
    b2 = jax.random.normal(k4, (D_IN,), dtype=jnp.float32) * 0.01
    gamma = 1.0 + 0.1 * jax.random.normal(k5, (D_IN,), dtype=jnp.float32)
    beta = 0.1 * jax.random.normal(k6, (D_IN,), dtype=jnp.float32)

    params = prepare_params(gamma, beta, w1, b1, w2, b2)   # hoisted weight prep
    out = fully_connected_output(x, params, block_rows=block_rows)
    out = jax.block_until_ready(out)

    ref = reference(x, gamma, beta, w1, b1, w2, b2)
    assert out.shape == (B, S, D_IN)
    # bf16 MXU operands (f32 accumulation / stats / residual): tolerance sized
    # for bf16's ~2^-9 relative operand rounding through two small matmuls.
    assert jnp.allclose(out, ref, atol=5e-2, rtol=5e-2), (
        f"mismatch vs reference: max abs err "
        f"{float(jnp.max(jnp.abs(out - ref))):.3e}")


if __name__ == "__main__":
    key = jax.random.PRNGKey(0)
    k_a, k_b, k_c = jax.random.split(key, 3)

    _run_case(k_a, 2, 8)                       # N = 16 (multiple of the 4-row pack)
    _run_case(k_b, 3, 5)                       # N = 15 (padded / ragged tail path)
    _run_case(k_c, 4, 2250, block_rows=512)    # N = 9000: multi-block grid, odd->even rebalance

    print("KERNEL_OK")
</pallas_src>

<mosaic_0001>
module attributes {stable_mosaic.version = 11 : i64} {
  func.func @ffn_kernel(%arg0: i32, %arg1: memref<8x128xf32, #tpu.memory_space<vmem>>, %arg2: memref<128x128xbf16, #tpu.memory_space<vmem>>, %arg3: memref<128x256xbf16, #tpu.memory_space<vmem>>, %arg4: memref<1x256xf32, #tpu.memory_space<vmem>>, %arg5: memref<256x128xbf16, #tpu.memory_space<vmem>>, %arg6: memref<1x128xf32, #tpu.memory_space<vmem>>, %arg7: memref<8x128xf32, #tpu.memory_space<vmem>>) attributes {dimension_semantics = [#tpu.dimension_semantics<parallel>], iteration_bounds = array<i64: 1>, scalar_prefetch = 0 : i64, scratch_operands = 0 : i64, tpu.core_type = #tpu.core_type<tc>, window_params = [{transform_indices = @transform_0, window_bounds = array<i64: 8, 128>}, {pipeline_mode = #tpu.pipeline_mode<synchronous>, transform_indices = @transform_1, window_bounds = array<i64: 128, 128>}, {pipeline_mode = #tpu.pipeline_mode<synchronous>, transform_indices = @transform_2, window_bounds = array<i64: 128, 256>}, {pipeline_mode = #tpu.pipeline_mode<synchronous>, transform_indices = @transform_3, window_bounds = array<i64: 1, 256>}, {pipeline_mode = #tpu.pipeline_mode<synchronous>, transform_indices = @transform_4, window_bounds = array<i64: 256, 128>}, {pipeline_mode = #tpu.pipeline_mode<synchronous>, transform_indices = @transform_5, window_bounds = array<i64: 1, 128>}, {transform_indices = @transform_6, window_bounds = array<i64: 8, 128>}]} {
    %c0 = arith.constant 0 : index
    %c0_0 = arith.constant 0 : index
    %0 = vector.load %arg1[%c0, %c0_0] : memref<8x128xf32, #tpu.memory_space<vmem>>, vector<8x128xf32>
    %c0_1 = arith.constant 0 : index
    %c0_2 = arith.constant 0 : index
    %1 = vector.load %arg2[%c0_1, %c0_2] : memref<128x128xbf16, #tpu.memory_space<vmem>>, vector<128x128xbf16>
    %2 = arith.truncf %0 : vector<8x128xf32> to vector<8x128xbf16>
    %cst = arith.constant dense<0.000000e+00> : vector<8x128xf32>
    %3 = tpu.matmul %2, %1, %cst {dimension_numbers = #tpu.dot_dimension_numbers<[1], [0], [0], [1], [0, 0, 1, 1], [], []>} : vector<8x128xbf16>, vector<128x128xbf16>, vector<8x128xf32> -> vector<8x128xf32>
    %4 = arith.mulf %0, %0 : vector<8x128xf32>
    %5 = arith.truncf %4 : vector<8x128xf32> to vector<8x128xbf16>
    %cst_3 = arith.constant dense<0.000000e+00> : vector<8x128xf32>
    %6 = tpu.matmul %5, %1, %cst_3 {dimension_numbers = #tpu.dot_dimension_numbers<[1], [0], [0], [1], [0, 0, 1, 1], [], []>} : vector<8x128xbf16>, vector<128x128xbf16>, vector<8x128xf32> -> vector<8x128xf32>
    %7 = arith.mulf %3, %3 : vector<8x128xf32>
    %8 = arith.subf %6, %7 : vector<8x128xf32>
    %cst_4 = arith.constant 0.000000e+00 : f32
    %9 = vector.broadcast %cst_4 : f32 to vector<8x128xf32>
    %10 = arith.maximumf %8, %9 : vector<8x128xf32>
    %11 = arith.subf %0, %3 : vector<8x128xf32>
    %cst_5 = arith.constant 9.99999974E-6 : f32
    %12 = vector.broadcast %cst_5 : f32 to vector<8x128xf32>
    %13 = arith.addf %10, %12 : vector<8x128xf32>
    %14 = math.rsqrt %13 : vector<8x128xf32>
    %15 = arith.mulf %11, %14 : vector<8x128xf32>
    %16 = arith.truncf %15 : vector<8x128xf32> to vector<8x128xbf16>
    %c0_6 = arith.constant 0 : index
    %c0_7 = arith.constant 0 : index
    %17 = vector.load %arg3[%c0_6, %c0_7] : memref<128x256xbf16, #tpu.memory_space<vmem>>, vector<128x256xbf16>
    %cst_8 = arith.constant dense<0.000000e+00> : vector<8x256xf32>
    %18 = tpu.matmul %16, %17, %cst_8 {dimension_numbers = #tpu.dot_dimension_numbers<[1], [0], [0], [1], [0, 0, 1, 1], [], []>} : vector<8x128xbf16>, vector<128x256xbf16>, vector<8x256xf32> -> vector<8x256xf32>
    %c0_9 = arith.constant 0 : index
    %c0_10 = arith.constant 0 : index
    %19 = vector.load %arg4[%c0_9, %c0_10] : memref<1x256xf32, #tpu.memory_space<vmem>>, vector<1x256xf32>
    %20 = vector.broadcast %19 : vector<1x256xf32> to vector<8x256xf32>
    %21 = arith.addf %18, %20 : vector<8x256xf32>
    %cst_11 = arith.constant 0.000000e+00 : f32
    %22 = vector.broadcast %cst_11 : f32 to vector<8x256xf32>
    %23 = arith.maximumf %21, %22 : vector<8x256xf32>
    %24 = arith.truncf %23 : vector<8x256xf32> to vector<8x256xbf16>
    %c0_12 = arith.constant 0 : index
    %c0_13 = arith.constant 0 : index
    %25 = vector.load %arg5[%c0_12, %c0_13] : memref<256x128xbf16, #tpu.memory_space<vmem>>, vector<256x128xbf16>
    %cst_14 = arith.constant dense<0.000000e+00> : vector<8x128xf32>
    %26 = tpu.matmul %24, %25, %cst_14 {dimension_numbers = #tpu.dot_dimension_numbers<[1], [0], [0], [1], [0, 0, 1, 1], [], []>} : vector<8x256xbf16>, vector<256x128xbf16>, vector<8x128xf32> -> vector<8x128xf32>
    %c0_15 = arith.constant 0 : index
    %c0_16 = arith.constant 0 : index
    %27 = vector.load %arg6[%c0_15, %c0_16] : memref<1x128xf32, #tpu.memory_space<vmem>>, vector<1x128xf32>
    %28 = vector.broadcast %27 : vector<1x128xf32> to vector<8x128xf32>
    %29 = arith.addf %26, %28 : vector<8x128xf32>
    %30 = arith.addf %0, %29 : vector<8x128xf32>
    %c0_17 = arith.constant 0 : index
    %c0_18 = arith.constant 0 : index
    %31 = vector.load %arg7[%c0_17, %c0_18] : memref<8x128xf32, #tpu.memory_space<vmem>>, vector<8x128xf32>
    tpu.vector_store %arg7[%c0_17, %c0_18], %30 {strides = array<i32>} : memref<8x128xf32, #tpu.memory_space<vmem>>, vector<8x128xf32>,
    return
  }
  func.func @transform_0(%arg0: i32) -> (i32, i32) {
    %c0_i32 = arith.constant 0 : i32
    %c0_i32_0 = arith.constant 0 : i32
    return %arg0, %c0_i32 : i32, i32
  }
  func.func @transform_1(%arg0: i32) -> (i32, i32) {
    %c0_i32 = arith.constant 0 : i32
    %c0_i32_0 = arith.constant 0 : i32
    %c0_i32_1 = arith.constant 0 : i32
    return %c0_i32, %c0_i32_0 : i32, i32
  }
  func.func @transform_2(%arg0: i32) -> (i32, i32) {
    %c0_i32 = arith.constant 0 : i32
    %c0_i32_0 = arith.constant 0 : i32
    %c0_i32_1 = arith.constant 0 : i32
    return %c0_i32, %c0_i32_0 : i32, i32
  }
  func.func @transform_3(%arg0: i32) -> (i32, i32) {
    %c0_i32 = arith.constant 0 : i32
    %c0_i32_0 = arith.constant 0 : i32
    %c0_i32_1 = arith.constant 0 : i32
    return %c0_i32, %c0_i32_0 : i32, i32
  }
  func.func @transform_4(%arg0: i32) -> (i32, i32) {
    %c0_i32 = arith.constant 0 : i32
    %c0_i32_0 = arith.constant 0 : i32
    %c0_i32_1 = arith.constant 0 : i32
    return %c0_i32, %c0_i32_0 : i32, i32
  }
  func.func @transform_5(%arg0: i32) -> (i32, i32) {
    %c0_i32 = arith.constant 0 : i32
    %c0_i32_0 = arith.constant 0 : i32
    %c0_i32_1 = arith.constant 0 : i32
    return %c0_i32, %c0_i32_0 : i32, i32
  }
  func.func @transform_6(%arg0: i32) -> (i32, i32) {
    %c0_i32 = arith.constant 0 : i32
    %c0_i32_0 = arith.constant 0 : i32
    return %arg0, %c0_i32 : i32, i32
  }
}

</mosaic_0001>

<bundles_post_ra>
// kernel: fully_connected_output.1
= control target key start
LH: loop header
LB: loop body
LE: loop exit
PB: predicated region body
PF: predicated region fallthrough
CT: control target
= control target key end

     0   :  { %11 = vsyncpa [#allocation3], 0  ;;  %s862_s0 = inlined_call_operand.vmem [shape: f32[8,128], index: 0, kind: input, shape index: {}]   ;;  %s863_s1 = inlined_call_operand.vmem [shape: bf16[128,128], index: 1, kind: input, shape index: {}]   ;;  %s864_s2 = inlined_call_operand.hbm [shape: bf16[128,256], index: 2, kind: input, shape index: {}]   ;;  %s865_s3 = inlined_call_operand.vmem [shape: f32[1,256], index: 3, kind: input, shape index: {}]   ;;  %s866_s4 = inlined_call_operand.hbm [shape: bf16[256,128], index: 4, kind: input, shape index: {}]   ;;  %s867_s5 = inlined_call_operand.vmem [shape: f32[1,128], index: 5, kind: input, shape index: {}]   ;;  %s868_s6 = inlined_call_operand.vmem [shape: f32[8,128], index: 6, kind: output, shape index: {}]  }
   0x1   :  { %12 = vsyncpa [#allocation5], 0  ;;  %s768_s21 = smov [#allocation2]  }
   0x2   :  { %s22_s22 = sshll.u32 %s768_s21, 4  ;;  %s23_s22 = int_to_ptr.vmem [resolvable:$true] %s22_s22 }
   0x3   :  { %s732_s23 = scalar_lea.vmem %s23_s22, 2048  ;;  %p737_p1 = scmp.lt.s32.totalorder %s23_s22, %s23_s22 }
   0x4   :  { %p733_p0 = scmp.ne.s32.totalorder %s23_s22, %s732_s23  ;;  %p738_p2 = scmp.lt.s32.totalorder %s732_s23, %s732_s23 }
   0x6   :  { %p739_p3 = por %p738_p2, %p737_p1 }
   0x8   :  { %p740_p4 = pnand %p739_p3, %p733_p0 }
   0xa   :  { %743 = shalt.err (!%p740_p4)
}
   0xb   :  { %s769_s24 = smov 128   ;;  %s770_s25 = smov 8  }
   0xc   :  { %28 = dma.hbm_to_vmem [thread:$0]  %s864_s2, 2048, %s23_s22, [#allocation3], %s769_s24, %s769_s24, %s770_s25  }
   0xd   :  { %s771_s28 = smov [#allocation4]  }
   0xe   :  { %s36_s29 = sshll.u32 %s771_s28, 4  ;;  %s37_s29 = int_to_ptr.vmem [resolvable:$true] %s36_s29 }
   0xf   :  { %s752_s30 = scalar_lea.vmem %s37_s29, 2048  ;;  %p757_p6 = scmp.lt.s32.totalorder %s37_s29, %s37_s29 }
  0x10   :  { %p753_p5 = scmp.ne.s32.totalorder %s37_s29, %s752_s30  ;;  %p758_p7 = scmp.lt.s32.totalorder %s752_s30, %s752_s30 }
  0x12   :  { %p759_p8 = por %p758_p7, %p757_p6 }
  0x14   :  { %p760_p9 = pnand %p759_p8, %p753_p5 }
  0x16   :  { %763 = shalt.err (!%p760_p9)
}
  0x17   :  { %s772_s7 = smov 64   ;;  %s773_s8 = smov 4  }
  0x18   :  { %42 = dma.hbm_to_vmem [thread:$0]  %s866_s4, 2048, %s37_s29, [#allocation5], %s772_s7, %s772_s7, %s773_s8  }
  0x19   :  { %764 = dma.done.wait [#allocation3], 2048  }
  0x1a   :  { %765 = vsyncadd [#allocation3], 4294965248 }
  0x1b   :  { %766 = dma.done.wait [#allocation5], 2048  }
  0x1c   :  { %767 = vsyncadd [#allocation5], 4294965248  ;;  %v774_v0 = vmov 0.0   ;;  %vm775_vm0 = vmmov 0   ;;  %v674_v1 = vld [vmem:[%s863_s1 + $0x38] sm:$0xff]   ;;  %v675_v2 = vld [vmem:[%s863_s1 + $0x30] sm:$0xff]   ;;  %v226_v62 = vlaneseq }
  0x1d   :  { %625 = vmatprep.subr.bf16.mxu0 %v774_v0  ;;  %645 = vmatprep.subr.bf16.mxu1 %v774_v0  ;;  %v676_v3 = vld [vmem:[%s863_s1 + $0x28] sm:$0xff]   ;;  %v677_v4 = vld [vmem:[%s863_s1 + $0x20] sm:$0xff]   ;;  %v678_v5 = vld [vmem:[%s863_s1 + $0x18] sm:$0xff]   ;;  %v776_v25 = vmov 0  }
  0x1e   :  { %641 = vmatprep.mubr.msk.bf16.mxu0 %vm775_vm0, %v774_v0  ;;  %661 = vmatprep.mubr.msk.bf16.mxu1 %vm775_vm0, %v774_v0  ;;  %v679_v6 = vld [vmem:[%s863_s1 + $0x10] sm:$0xff]   ;;  %v680_v7 = vld [vmem:[%s863_s1 + $0x8] sm:$0xff]   ;;  %v842_v8 = vld [vmem:[%s862_s0] sm:$0xff]  ;;  %v227_v63 = vshrl.u32 %v226_v62, 7 }
  0x1f   :  { %626 = vmatpush3.bf16.msra.mxu0 %v674_v1  ;;  %646 = vmatpush3.bf16.msra.mxu1 %v674_v1  ;;  %v158_v9 = vmul.f32 %v842_v8, %v842_v8  ;;  %v681_v10 = vld [vmem:[%s863_s1] sm:$0xff]   ;;  %v684_v11 = vld [vmem:[#allocation2 + $0x74] ss:$8 sps:$4 sm:$0xff]   ;;  %v69_v12 = vpack.c.bf16 %v842_v8, %v842_v8  ;;  %v682_v14 = vld [vmem:[#allocation2 + $0x70] ss:$8 sps:$4 sm:$0xff]  }
  0x20   :  { %627 = vmatprep.subr.bf16.mxu0 %v774_v0  ;;  %647 = vmatprep.subr.bf16.mxu1 %v774_v0  ;;  %v687_v15 = vld [vmem:[#allocation2 + $0x64] ss:$8 sps:$4 sm:$0xff]   ;;  %v685_v16 = vld [vmem:[#allocation2 + $0x60] ss:$8 sps:$4 sm:$0xff]   ;;  %v690_v17 = vld [vmem:[#allocation2 + $0x54] ss:$8 sps:$4 sm:$0xff]  }
  0x21   :  { %v159_v13 = vpack.c.bf16 %v158_v9, %v158_v9  ;;  %v688_v18 = vld [vmem:[#allocation2 + $0x50] ss:$8 sps:$4 sm:$0xff]   ;;  %v693_v19 = vld [vmem:[#allocation2 + $0x44] ss:$8 sps:$4 sm:$0xff]   ;;  %v691_v20 = vld [vmem:[#allocation2 + $0x40] ss:$8 sps:$4 sm:$0xff]  }
  0x22   :  { %v694_v21 = vld [vmem:[#allocation2 + $0x30] ss:$8 sps:$4 sm:$0xff]   ;;  %v696_v22 = vld [vmem:[#allocation2 + $0x34] ss:$8 sps:$4 sm:$0xff]   ;;  %v699_v23 = vld [vmem:[#allocation2 + $0x24] ss:$8 sps:$4 sm:$0xff]  }
  0x23   :  { %628 = vmatpush3.bf16.msra.mxu0 %v675_v2  ;;  %648 = vmatpush3.bf16.msra.mxu1 %v675_v2  ;;  %v697_v24 = vld [vmem:[#allocation2 + $0x20] ss:$8 sps:$4 sm:$0xff]   ;;  %v702_v26 = vld [vmem:[#allocation2 + $0x14] ss:$8 sps:$4 sm:$0xff]   ;;  %v700_v27 = vld [vmem:[#allocation2 + $0x10] ss:$8 sps:$4 sm:$0xff]  }
  0x24   :  { %629 = vmatprep.subr.bf16.mxu0 %v774_v0  ;;  %649 = vmatprep.subr.bf16.mxu1 %v774_v0  ;;  %v705_v28 = vld [vmem:[#allocation2 + $0x4] ss:$8 sps:$4 sm:$0xff]   ;;  %v703_v29 = vld [vmem:[#allocation2] ss:$8 sps:$4 sm:$0xff]   ;;  %v706_v30 = vld [vmem:[#allocation4 + $0x78] sm:$0xff]   ;;  %v232_v2 = vsub.s32 1, %v227_v63 }
  0x25   :  { %v707_v31 = vld [vmem:[#allocation4 + $0x38] sm:$0xff]   ;;  %v708_v32 = vld [vmem:[#allocation4 + $0x70] sm:$0xff]   ;;  %v710_v34 = vld [vmem:[#allocation4 + $0x68] sm:$0xff]  }
  0x26   :  { %v709_v33 = vld [vmem:[#allocation4 + $0x30] sm:$0xff]   ;;  %v711_v35 = vld [vmem:[#allocation4 + $0x28] sm:$0xff]   ;;  %v712_v36 = vld [vmem:[#allocation4 + $0x60] sm:$0xff]  }
  0x27   :  { %630 = vmatpush3.bf16.msra.mxu0 %v676_v3  ;;  %650 = vmatpush3.bf16.msra.mxu1 %v676_v3  ;;  %v713_v37 = vld [vmem:[#allocation4 + $0x20] sm:$0xff]   ;;  %v714_v38 = vld [vmem:[#allocation4 + $0x58] sm:$0xff]   ;;  %v716_v40 = vld [vmem:[#allocation4 + $0x50] sm:$0xff]  }
  0x28   :  { %631 = vmatprep.subr.bf16.mxu0 %v774_v0  ;;  %651 = vmatprep.subr.bf16.mxu1 %v774_v0  ;;  %v715_v39 = vld [vmem:[#allocation4 + $0x18] sm:$0xff]   ;;  %v717_v41 = vld [vmem:[#allocation4 + $0x10] sm:$0xff]   ;;  %v718_v58 = vld [vmem:[#allocation4 + $0x48] sm:$0xff]  }
  0x29   :  { %v719_v59 = vld [vmem:[#allocation4 + $0x8] sm:$0xff]   ;;  %v720_v60 = vld [vmem:[#allocation4 + $0x40] sm:$0xff]  }
  0x2a   :  { %v721_v61 = vld [vmem:[#allocation4] sm:$0xff]  }
  0x2b   :  { %632 = vmatpush3.bf16.msra.mxu0 %v677_v4  ;;  %652 = vmatpush3.bf16.msra.mxu1 %v677_v4  ;;  %v224_v1 = vld [vmem:[%s865_s3] sm:$0x3] }
  0x2c   :  { %633 = vmatprep.subr.bf16.mxu0 %v774_v0  ;;  %653 = vmatprep.subr.bf16.mxu1 %v774_v0  ;;  %v233_v4 = vrot.slane %v224_v1, %v232_v2 }
  0x2f   :  { %634 = vmatpush3.bf16.msra.mxu0 %v678_v5  ;;  %654 = vmatpush3.bf16.msra.mxu1 %v678_v5 }
  0x30   :  { %635 = vmatprep.subr.bf16.mxu0 %v774_v0  ;;  %655 = vmatprep.subr.bf16.mxu1 %v774_v0 }
  0x33   :  { %636 = vmatpush3.bf16.msra.mxu0 %v679_v6  ;;  %656 = vmatpush3.bf16.msra.mxu1 %v679_v6 }
  0x34   :  { %637 = vmatprep.subr.bf16.mxu0 %v774_v0  ;;  %657 = vmatprep.subr.bf16.mxu1 %v774_v0 }
  0x37   :  { %638 = vmatpush3.bf16.msra.mxu0 %v680_v7  ;;  %658 = vmatpush3.bf16.msra.mxu1 %v680_v7 }
  0x38   :  { %639 = vmatprep.subr.bf16.mxu0 %v774_v0  ;;  %659 = vmatprep.subr.bf16.mxu1 %v774_v0  ;;  %v228_v0 = vsub.s32 0, %v227_v63 }
  0x3a   :  { %v229_v3 = vrot.slane %v224_v1, %v228_v0 }
  0x3b   :  { %640 = vmatpush3.bf16.msra.mxu0 %v681_v10  ;;  %660 = vmatpush3.bf16.msra.mxu1 %v681_v10 }
  0x3c   :  { %316 = vmatprep.subr.bf16.mxu0 %v684_v11  ;;  %603 = vmatprep.subr.bf16.mxu1 %v706_v30 }
  0x3e   :  { %642 = vmatmul.mubr.bf16.vlgmr.msra.gmra.mxu0 %v69_v12  ;;  %662 = vmatmul.mubr.bf16.vlgmr.msra.gmra.mxu1 %v159_v13 }
  0x3f   :  { %317 = vmatpush1.bf16.msra.mxu0 %v682_v14  ;;  %348 = vmatprep.mubr.bf16.mxu0 %v776_v25 }
  0x40   :  { %318 = vmatprep.subr.bf16.mxu0 %v687_v15  ;;  %604 = vmatpush3.bf16.msra.mxu1 %v707_v31 }
  0x41   :  { %605 = vmatprep.subr.bf16.mxu1 %v708_v32 }
  0x43   :  { %319 = vmatpush1.bf16.msra.mxu0 %v685_v16 }
  0x44   :  { %320 = vmatprep.subr.bf16.mxu0 %v690_v17  ;;  %606 = vmatpush3.bf16.msra.mxu1 %v709_v33  ;;  %v568_v17 = vld [vmem:[%s867_s5] ss:$0 sm:$0xff] }
  0x45   :  { %607 = vmatprep.subr.bf16.mxu1 %v710_v34 }
  0x47   :  { %321 = vmatpush1.bf16.msra.mxu0 %v688_v18 }
  0x48   :  { %322 = vmatprep.subr.bf16.mxu0 %v693_v19  ;;  %608 = vmatpush3.bf16.msra.mxu1 %v711_v35 }
  0x49   :  { %609 = vmatprep.subr.bf16.mxu1 %v712_v36 }
  0x4b   :  { %323 = vmatpush1.bf16.msra.mxu0 %v691_v20 }
  0x4c   :  { %324 = vmatprep.subr.bf16.mxu0 %v696_v22  ;;  %610 = vmatpush3.bf16.msra.mxu1 %v713_v37 }
  0x4d   :  { %611 = vmatprep.subr.bf16.mxu1 %v714_v38 }
  0x4f   :  { %325 = vmatpush1.bf16.msra.mxu0 %v694_v21 }
  0x50   :  { %326 = vmatprep.subr.bf16.mxu0 %v699_v23  ;;  %612 = vmatpush3.bf16.msra.mxu1 %v715_v39 }
  0x51   :  { %613 = vmatprep.subr.bf16.mxu1 %v716_v40 }
  0x53   :  { %327 = vmatpush1.bf16.msra.mxu0 %v697_v24 }
  0x54   :  { %328 = vmatprep.subr.bf16.mxu0 %v702_v26  ;;  %614 = vmatpush3.bf16.msra.mxu1 %v717_v41 }
  0x55   :  { %615 = vmatprep.subr.bf16.mxu1 %v718_v58 }
  0x57   :  { %329 = vmatpush1.bf16.msra.mxu0 %v700_v27 }
  0x58   :  { %330 = vmatprep.subr.bf16.mxu0 %v705_v28  ;;  %616 = vmatpush3.bf16.msra.mxu1 %v719_v59 }
  0x59   :  { %617 = vmatprep.subr.bf16.mxu1 %v720_v60 }
  0x5b   :  { %331 = vmatpush1.bf16.msra.mxu0 %v703_v29 }
  0x5c   :  { %618 = vmatpush3.bf16.msra.mxu1 %v721_v61 }
  0xfe   :  { %v152_v42 = vpop.f32.mrf.mxu0  ;;  %v194_v43 = vpop.f32.mrf.mxu1 }
  0xff   :  { %v200_v44 = vmul.f32 %v152_v42, %v152_v42  ;;  %v203_v54 = vsub.f32 %v842_v8, %v152_v42 }
 0x100   :  { %v643_v45 = vpop.f32.mrf.mxu0  ;;  %v663_v46 = vpop.f32.mrf.mxu1 }
 0x101   :  { %v201_v47 = vsub.f32 %v194_v43, %v200_v44 }
 0x102   :  { %v155_v48 = vpop.f32.mrf.mxu0  ;;  %v197_v49 = vpop.f32.mrf.mxu1 }
 0x103   :  { %v202_v50 = vmax.f32 %v201_v47, 0.0 }
 0x104   :  { %v644_v51 = vpop.f32.mrf.mxu0  ;;  %v664_v52 = vpop.f32.mrf.mxu1 }
 0x105   :  { %v204_v53 = vadd.f32 1e-05, %v202_v50 }
 0x107   :  { %722 = vrsqrt.f32 %v204_v53 }
 0x114   :  { %v723_v55 = vpop.eup %722 }
 0x115   :  { %v206_v56 = vmul.f32 %v723_v55, %v203_v54 }
 0x117   :  { %v207_v57 = vpack.c.bf16 %v206_v56, %v206_v56 }
 0x119   :  { %349 = vmatmul.mubr.bf16.vlgmr.msra.gmra.mxu0 %v207_v57 }
 0x1d9   :  { %v350_v5 = vpop.f32.mrf.mxu0 }
 0x1da   :  { %v351_v6 = vadd.f32 %v350_v5, %v229_v3 }
 0x1db   :  { %v352_v7 = vpop.f32.mrf.mxu0 }
 0x1dc   :  { %v353_v9 = vadd.f32 %v352_v7, %v233_v4  ;;  %v357_v10 = vmax.f32 %v351_v6, 0.0 }
 0x1dd   :  { %v354_v11 = vpop.f32.mrf.mxu0 }
 0x1de   :  { %v358_v12 = vmax.f32 %v353_v9, 0.0  ;;  %v359_v15 = vpack.c.bf16 %v357_v10, %v357_v10 }
 0x1df   :  { %v355_v13 = vpop.f32.mrf.mxu0 }
 0x1e0   :  { %v360_v14 = vpack.c.bf16 %v358_v12, %v358_v12 }
 0x1e2   :  { %528 = vmatprep.mubr.bf16.mxu1 %v360_v14 }
 0x1e3   :  { %529 = vmatmul.mubr.bf16.vlgmr.msra.gmra.mxu1 %v359_v15 }
 0x2a3   :  { %v619_v16 = vpop.f32.mrf.mxu1 }
 0x2a5   :  { %v620_v18 = vpop.f32.mrf.mxu1 }
 0x2a6   :  { %v621_v19 = vadd.f32 %v620_v18, %v619_v16 }
 0x2a7   :  { %v622_v20 = vpop.f32.mrf.mxu1 }
 0x2a8   :  { %v531_v21 = vadd.f32 %v621_v19, %v568_v17 }
 0x2a9   :  { %v623_v22 = vpop.f32.mrf.mxu1 }
 0x2aa   :  { %v536_v23 = vadd.f32 %v531_v21, %v842_v8 }
 0x2ac   :  { %537 = vst [vmem:[%s868_s6] sm:$0xff] %v536_v23 }
 0x2ad   :  { %542 = vsyncpa [#allocation3], 1 }
 0x2ae   :  { %543 = vsyncpa [#allocation5], 1 }

</bundles_post_ra>
